<compile_context>
chip_gen: v7x
topology: tpu7x:2x2x1
jax: 0.10.0
libtpu: 0.0.40
codegen_flags: <defaults>
</compile_context>

<pallas_src>
import functools

import numpy as np
import jax
import jax.numpy as jnp
from jax.experimental import pallas as pl
from jax.experimental.pallas import tpu as pltpu


# ----------------------------------------------------------------------------- helpers
def _round_up(x, m):
    return (x + m - 1) // m * m


def _round_down(x, m):
    return (x // m) * m


def _vmem_capacity_bytes():
    try:
        return int(pltpu.get_tpu_info().vmem_capacity_bytes)
    except Exception:
        return 64 * 1024 * 1024  # assume the smallest per-core VMEM (v7x) if query fails


# ----------------------------------------------------------------------------- kernels
def _kernel_lane_dense(x_ref, o_ref):
    # x_ref: (BN, C, TS) input tile; o_ref: (BN, 1, 8, TS*C//8) lane-dense output tile.
    bn, c, ts = x_ref.shape
    for b in range(bn):                        # static unroll; BN is small
        t = jnp.transpose(x_ref[b], (1, 0))    # (TS, C) — XLU transpose
        o_ref[b, 0] = t.reshape(8, (ts * c) // 8)


def _kernel_plain(x_ref, o_ref):
    # x_ref: (BN, C, TS); o_ref: (BN, TS, C)  (lane dim C; used when C >= 128 or as fallback)
    bn = x_ref.shape[0]
    for b in range(bn):
        o_ref[b] = jnp.transpose(x_ref[b], (1, 0))


# ----------------------------------------------------------------------------- planning
def _plan(N, S, C, itemsize, budget, split_for_two_cores, allow_lane_dense):
    """Choose (TS, lane_dense, BN, double-buffered VMEM footprint)."""
    sub = max(8, 32 // itemsize)                       # sublane quantum for this dtype
    lane_dense_possible = allow_lane_dense and (C < 128) and ((S * C) % 8 == 0)

    def footprint(ts, lane_dense):
        # Padded, double-buffered VMEM bytes per image per grid step.
        tin = _round_up(C, sub) * _round_up(ts, 128) * itemsize
        if lane_dense:
            tout = 8 * _round_up(-(-(ts * C) // 8), 128) * itemsize
        else:
            tout = _round_up(ts, sub) * _round_up(C, 128) * itemsize
        return 2 * (tin + tout)

    def largest_fit(lane_dense, cap):
        ts = min(cap, S)
        if footprint(ts, lane_dense) <= budget or ts <= 128:
            return ts
        per128 = footprint(128, lane_dense)
        ts = max(128, min(_round_down(ts, 128), (budget // max(per128, 1)) * 128))
        while ts > 128 and footprint(ts, lane_dense) > budget:
            ts -= 128
        return ts

    cap = S
    if split_for_two_cores and S >= 1024:
        # batch-1 on a 2-TensorCore chip (v7x): make sure there are >= 2 S tiles
        cap = max(128, _round_down((S + 1) // 2, 128))

    ts, lane_dense = None, False
    if lane_dense_possible:
        lim = largest_fit(True, cap)
        if lim >= S:
            ts, lane_dense = S, True
        else:
            # largest 128-aligned tile that exactly divides S (keeps the slab contiguous)
            t = _round_down(lim, 128)
            while t >= 128:
                if S % t == 0:
                    ts, lane_dense = t, True
                    break
                t -= 128
            if ts is None and cap < S and footprint(S, True) <= budget:
                # No aligned divisor under the 2-TC split cap: prefer lane density.
                ts, lane_dense = S, True
    if ts is None:
        ts = largest_fit(False, cap)
        lane_dense = False

    # Fold several images into one grid step when a single image's tile is tiny.
    bn = 1
    if N > 1 and ts >= S:
        per_img = footprint(ts, lane_dense) // 2
        if per_img < (512 << 10):
            bn_cap = min(N // 2, 8, max(1, (2 << 20) // max(per_img, 1)))
            for cand in range(bn_cap, 1, -1):
                if N % cand == 0:
                    bn = cand
                    break

    return ts, lane_dense, bn, bn * footprint(ts, lane_dense)


# ----------------------------------------------------------------------------- call builder
@functools.lru_cache(maxsize=64)
def _build_call(N, S, C, dtype, ts, lane_dense, bn, vmem_limit, itemsize):
    grid_n = N // bn
    if lane_dense:
        n_tiles = S // ts
        lanes = (ts * C) // 8
        out_shape = jax.ShapeDtypeStruct((N, n_tiles, 8, lanes), dtype)
        out_spec = pl.BlockSpec((bn, 1, 8, lanes), lambda n, s: (n, s, 0, 0))
        kernel = _kernel_lane_dense
        grid = (grid_n, n_tiles)
    else:
        out_shape = jax.ShapeDtypeStruct((N, S, C), dtype)
        out_spec = pl.BlockSpec((bn, ts, C), lambda n, s: (n, s, 0))
        kernel = _kernel_plain
        grid = (grid_n, pl.cdiv(S, ts))

    return pl.pallas_call(
        kernel,
        out_shape=out_shape,
        grid=grid,
        in_specs=[pl.BlockSpec((bn, C, ts), lambda n, s: (n, 0, s))],
        out_specs=out_spec,
        compiler_params=pltpu.CompilerParams(
            dimension_semantics=("parallel", "parallel"),
            vmem_limit_bytes=int(vmem_limit)),
        cost_estimate=pl.CostEstimate(
            flops=0, transcendentals=0,
            bytes_accessed=2 * N * C * S * itemsize),
    )


# ----------------------------------------------------------------------------- public API
def to_channels_last(x, *, vmem_budget=None):
    """Pallas TPU equivalent of torch `x.permute(0, 2, 3, 1)` (NCHW -> NHWC)."""
    N, C, H, W = x.shape
    S = H * W
    itemsize = int(jnp.dtype(x.dtype).itemsize)
    x_flat = x.reshape(N, C, S)

    capacity = _vmem_capacity_bytes()
    if vmem_budget is None:
        # ~3/4 of physical VMEM for the double-buffered tiles:
        # ~48 MiB on v7x (64 MiB/TC), ~96 MiB on v5e/v6e (128 MiB).
        vmem_budget = (capacity * 3) // 4

    split = (N == 1)  # give both v7x TensorCores work on batch-1 inputs

    for allow_ld in (True, False):
        ts, lane_dense, bn, footprint = _plan(
            N, S, C, itemsize, int(vmem_budget),
            split_for_two_cores=split, allow_lane_dense=allow_ld)
        vmem_limit = min(capacity, max(32 << 20, footprint + (8 << 20)))
        call = _build_call(N, S, C, jnp.dtype(x.dtype), ts, lane_dense, bn,
                           vmem_limit, itemsize)
        if lane_dense:
            try:
                out = call(x_flat)
            except Exception:
                # Mosaic rejected the lane-dense transpose+flatten relayout on this
                # backend; fall back to the plain (TS, C)-block store (always lowers).
                continue
        else:
            out = call(x_flat)
        return out.reshape(N, H, W, C)

    raise RuntimeError("to_channels_last: no viable Pallas lowering found")


class ToChannelsLastPallas:
    """Drop-in port of the torch `to_channels_last` module."""

    def __call__(self, x):
        return to_channels_last(x)


# ----------------------------------------------------------------------------- self-test
if __name__ == "__main__":
    mod = ToChannelsLastPallas()

    # small case matching the module's typical usage (exercises full-S lane-dense path)
    key = jax.random.PRNGKey(0)
    x = jax.random.normal(key, (2, 4, 16, 16), jnp.float32)
    out = jax.block_until_ready(mod(x))
    assert out.shape == (2, 16, 16, 4)
    ref = jnp.transpose(x, (0, 2, 3, 1))
    np.testing.assert_array_equal(np.asarray(out), np.asarray(ref))

    # batch-1 case: exercises the tiled lane-dense path and the 2-TensorCore S split
    x2 = jax.random.normal(jax.random.PRNGKey(1), (1, 8, 64, 64), jnp.float32)
    out2 = jax.block_until_ready(mod(x2))
    np.testing.assert_array_equal(
        np.asarray(out2), np.asarray(jnp.transpose(x2, (0, 2, 3, 1))))

    # wide-channel case: exercises the plain (already lane-dense) C >= 128 path
    x3 = jax.random.normal(jax.random.PRNGKey(2), (2, 128, 8, 16), jnp.float32)
    out3 = jax.block_until_ready(mod(x3))
    np.testing.assert_array_equal(
        np.asarray(out3), np.asarray(jnp.transpose(x3, (0, 2, 3, 1))))

    print("KERNEL_OK")
</pallas_src>

<mosaic_0001>
module attributes {stable_mosaic.version = 11 : i64} {
  func.func @_kernel_lane_dense(%arg0: i32, %arg1: i32, %arg2: memref<1x4x256xf32, #tpu.memory_space<vmem>>, %arg3: memref<1x1x8x128xf32, #tpu.memory_space<vmem>>) attributes {dimension_semantics = [#tpu.dimension_semantics<parallel>, #tpu.dimension_semantics<parallel>], iteration_bounds = array<i64: 2, 1>, scalar_prefetch = 0 : i64, scratch_operands = 0 : i64, tpu.core_type = #tpu.core_type<tc>, window_params = [{transform_indices = @transform_0, window_bounds = array<i64: 1, 4, 256>}, {transform_indices = @transform_1, window_bounds = array<i64: 1, 1, 8, 128>}]} {
    %c0 = arith.constant 0 : index
    %c0_0 = arith.constant 0 : index
    %c0_1 = arith.constant 0 : index
    %0 = vector.load %arg2[%c0, %c0_0, %c0_1] : memref<1x4x256xf32, #tpu.memory_space<vmem>>, vector<1x4x256xf32>
    %1 = vector.shape_cast %0 : vector<1x4x256xf32> to vector<4x256xf32>
    %2 = tpu.transpose %1, [1, 0] : vector<4x256xf32> -> vector<256x4xf32>
    %3 = vector.shape_cast %2 : vector<256x4xf32> to vector<8x128xf32>
    %c0_2 = arith.constant 0 : index
    %c0_3 = arith.constant 0 : index
    %c0_4 = arith.constant 0 : index
    %c0_5 = arith.constant 0 : index
    %4 = vector.load %arg3[%c0_2, %c0_3, %c0_4, %c0_5] : memref<1x1x8x128xf32, #tpu.memory_space<vmem>>, vector<1x1x8x128xf32>
    %5 = vector.shape_cast %4 : vector<1x1x8x128xf32> to vector<8x128xf32>
    %6 = vector.shape_cast %3 : vector<8x128xf32> to vector<1x1x8x128xf32>
    tpu.vector_store %arg3[%c0_2, %c0_3, %c0_4, %c0_5], %6 {strides = array<i32>} : memref<1x1x8x128xf32, #tpu.memory_space<vmem>>, vector<1x1x8x128xf32>,
    return
  }
  func.func @transform_0(%arg0: i32, %arg1: i32) -> (i32, i32, i32) {
    %c0_i32 = arith.constant 0 : i32
    %c0_i32_0 = arith.constant 0 : i32
    return %arg0, %c0_i32, %arg1 : i32, i32, i32
  }
  func.func @transform_1(%arg0: i32, %arg1: i32) -> (i32, i32, i32, i32) {
    %c0_i32 = arith.constant 0 : i32
    %c0_i32_0 = arith.constant 0 : i32
    %c0_i32_1 = arith.constant 0 : i32
    return %arg0, %arg1, %c0_i32, %c0_i32_0 : i32, i32, i32, i32
  }
}

module attributes {stable_mosaic.version = 11 : i64} {
  func.func @_kernel_plain(%arg0: i32, %arg1: i32, %arg2: memref<1x4x256xf32, #tpu.memory_space<vmem>>, %arg3: memref<1x256x4xf32, #tpu.memory_space<vmem>>) attributes {dimension_semantics = [#tpu.dimension_semantics<parallel>, #tpu.dimension_semantics<parallel>], iteration_bounds = array<i64: 2, 1>, scalar_prefetch = 0 : i64, scratch_operands = 0 : i64, tpu.core_type = #tpu.core_type<tc>, window_params = [{transform_indices = @transform_0, window_bounds = array<i64: 1, 4, 256>}, {transform_indices = @transform_1, window_bounds = array<i64: 1, 256, 4>}]} {
    %c0 = arith.constant 0 : index
    %c0_0 = arith.constant 0 : index
    %c0_1 = arith.constant 0 : index
    %0 = vector.load %arg2[%c0, %c0_0, %c0_1] : memref<1x4x256xf32, #tpu.memory_space<vmem>>, vector<1x4x256xf32>
    %1 = vector.shape_cast %0 : vector<1x4x256xf32> to vector<4x256xf32>
    %2 = tpu.transpose %1, [1, 0] : vector<4x256xf32> -> vector<256x4xf32>
    %c0_2 = arith.constant 0 : index
    %c0_3 = arith.constant 0 : index
    %c0_4 = arith.constant 0 : index
    %3 = vector.load %arg3[%c0_2, %c0_3, %c0_4] : memref<1x256x4xf32, #tpu.memory_space<vmem>>, vector<1x256x4xf32>
    %4 = vector.shape_cast %3 : vector<1x256x4xf32> to vector<256x4xf32>
    %5 = vector.shape_cast %2 : vector<256x4xf32> to vector<1x256x4xf32>
    tpu.vector_store %arg3[%c0_2, %c0_3, %c0_4], %5 {strides = array<i32>} : memref<1x256x4xf32, #tpu.memory_space<vmem>>, vector<1x256x4xf32>,
    return
  }
  func.func @transform_0(%arg0: i32, %arg1: i32) -> (i32, i32, i32) {
    %c0_i32 = arith.constant 0 : i32
    %c0_i32_0 = arith.constant 0 : i32
    return %arg0, %c0_i32, %arg1 : i32, i32, i32
  }
  func.func @transform_1(%arg0: i32, %arg1: i32) -> (i32, i32, i32) {
    %c0_i32 = arith.constant 0 : i32
    %c0_i32_0 = arith.constant 0 : i32
    return %arg0, %arg1, %c0_i32 : i32, i32, i32
  }
}

</mosaic_0001>

<bundles_post_ra>
// kernel: tpu_custom_call.1
= control target key start
LH: loop header
LB: loop body
LE: loop exit
PB: predicated region body
PF: predicated region fallthrough
CT: control target
= control target key end

     0   :  { %6 = vsyncpa [#allocation3], 0  ;;  %s715_s0 = inlined_call_operand.hbm [shape: f32[2,4,256], index: 0, kind: input, shape index: {}]   ;;  %s716_s1 = inlined_call_operand.vmem [shape: f32[2,256,4], index: 1, kind: output, shape index: {}]  }
   0x1   :  { %8 = vsyncpa [#allocation3 + $0x1], 0  ;;  %s524_s6 = smov 0   ;;  %s526_s7 = smov 0  }
   0x2   :  { %s528_s8 = smov 0   ;;  %s530_s9 = smov 0  }
   0x3   :  { %s532_s10 = smov 0   ;;  %s534_s11 = smov 0  }
   0x4 LB: > { %s359_s12 = sadd.s32 4294967295, %s511_s11   ;;  %s26_s13 = sadd.s32 1, %s507_s10  ;;  %s511_s11 = sphi %s534_s11, %s14_s11   ;;  %s507_s10 = sphi %s532_s10, %s726_s10   ;;  %s503_s9 = sphi %s530_s9, %s725_s9   ;;  %s499_s8 = sphi %s528_s8, %s724_s8   ;;  %s495_s7 = sphi %s526_s7, %s723_s7   ;;  %s491_s6 = sphi %s524_s6, %s722_s6  }
   0x5   : > { %p28_p0 = scmp.ge.s32.totalorder %s26_s13, 2  ;;  %s35_s14 = sadd.s32 1, %s499_s8 }
   0x6   : > { %p42_p1 = scmp.ne.s32.totalorder %s499_s8, %s495_s7  ;;  %p43_p2 = scmp.eq.s32.totalorder %s511_s11, 0 }
   0x7   : > { %s728_s13 = smov (%p28_p0, %s26_s13), 0  ;;  %p48_p4 = scmp.ne.s32.totalorder %s495_s7, %s491_s6 }
   0x8   : > { %p560_p3 = por %p43_p2, %p42_p1  ;;  %s30_s16 = ssub.s32 %s507_s10, %s728_s13 }
   0x9   : > { %p49_p5 = scmp.eq.s32.totalorder %s359_s12, 0  ;;  %p33_p6 = scmp.eq.s32.totalorder %s30_s16, 0 }
   0xa   : > { %p380_p8 = scmp.lt.s32.totalorder %s511_s11, 2  ;;  %s100_s19 = sand.u32 1, %s499_s8  }
   0xb   : > { %p567_p7 = por %p49_p5, %p48_p4  ;;  %s372_s20 = sshll.u32 %s507_s10, 7 }
   0xc   : > { %s573_s18 = scalar_select %p33_p6, %s499_s8, %s35_s14  }
   0xd   : > { %s363_s21 = sshll.u32 %s100_s19, 3  ;;  %s580_s24 = scalar_lea.hbm %s715_s0, %s372_s20 }
   0xe   : > { %s104_s25 = scalar_lea.vmem [#allocation2], %s363_s21  ;;  %p584_p9 = pnand %p380_p8, %p560_p3 }
   0xf   : > { %s114_s26 = sshll.u32 %s104_s25, 4  ;;  %s101_s28 = scalar_lea.sflag [#allocation3], %s100_s19  ;;  %s588_s26 = int_to_ptr.vmem [resolvable:$true] %s114_s26 }
  0x10   : > { %s431_s29 = scalar_lea.hbm %s580_s24, 128  ;;  %p433_p13 = pneg %p584_p9 }
  0x11   : > { %p432_p12 = scmp.ne.s32.totalorder %s580_s24, %s431_s29  ;;  %s436_s3 = scalar_lea.hbm %s715_s0, 256 }
  0x12   : > { %p437_p2 = scmp.lt.u32.totalorder %s580_s24, %s715_s0  ;;  %p438_p3 = scmp.lt.u32.totalorder %s436_s3, %s431_s29 }
  0x13   : > { %p434_p0 = pnand %p433_p13, %p432_p12  ;;  %p440_p5 = scmp.lt.u32.totalorder %s431_s29, %s580_s24 }
  0x14   : > { %p439_p4 = por %p438_p3, %p437_p2 }
  0x15   : > { %p435_p1 = pneg %p434_p0 }
  0x16   : > { %p441_p6 = por %p440_p5, %p439_p4 }
  0x18   : > { %p442_p8 = pnand %p441_p6, %p435_p1 }
  0x1a   : > { %445 = shalt.err (!%p442_p8)
}
  0x1b   : > { %s446_s6 = scalar_lea.vmem %s588_s26, 128  ;;  %s513_s12 = smov [#allocation2]  }
  0x1c   : > { %p447_p12 = scmp.ne.s32.totalorder %s588_s26, %s446_s6  ;;  %s451_s14 = sshll.u32 %s513_s12, 4  ;;  %s452_s14 = int_to_ptr.vmem [resolvable:$false] %s451_s14 }
  0x1d   : > { %s453_s15 = scalar_lea.vmem %s452_s14, 256  ;;  %p454_p11 = scmp.lt.s32.totalorder %s588_s26, %s452_s14 }
  0x1e   : > { %p449_p0 = pnand %p447_p12, %p433_p13  ;;  %p455_p2 = scmp.lt.s32.totalorder %s453_s15, %s446_s6 }
  0x20   : > { %p450_p10 = pneg %p449_p0  ;;  %p456_p3 = por %p455_p2, %p454_p11 }
  0x22   : > { %p457_p4 = pnand %p456_p3, %p450_p10 }
  0x24   : > { %460 = shalt.err (!%p457_p4)
}
  0x25   : > { %379 = dma.hbm_to_vmem [thread:$0]  (!%p584_p9), %s580_s24, 128, %s588_s26, %s101_s28  }
  0x26   : > { %p720_p1 = scmp.lt.s32.totalorder %s511_s11, 3  ;;  %p721_p5 = scmp.ge.s32.totalorder %s511_s11, 1 }
  0x28   : > { %p120_p13 = pnand %p721_p5, %p720_p1 }
  0x29   : > { %s125_s16 = sand.u32 (!%p120_p13), 1, %s495_s7  }
  0x2a   : > { %123 = sbr.rel (%p120_p13) target bundleno = 305 (0x131), region = 24  ;;  %s367_s19 = sshll.u32 (!%p120_p13), %s125_s16, 3 }
  0x2b   : > { %s126_s20 = scalar_lea.sflag (!%p120_p13), [#allocation3], %s125_s16  ;;  %s129_s21 = scalar_lea.vmem (!%p120_p13), [#allocation2], %s367_s19 }
  0x31   : > { %486 = dma.done.wait (%p567_p7), %s126_s20, 128  }
  0x32   : > { %488 = vsyncadd (%p567_p7), %s126_s20, 4294967168  ;;  %v163_v0 = vld [vmem:[%s129_s21] sm:$0xff]  ;;  %p154_p9 = scmp.lt.s32.totalorder %s503_s9, 1  ;;  %vm231_vm0 = vcmask 31744  }
  0x33   : > { %167 = vxpose.xlu0.b32.start.end [1/1] (short) %v163_v0, 128  ;;  %v165_v1 = vcombine.high %v163_v0, %v163_v0 }
  0x34   : > { %s730_s9 = smov (!%p154_p9, %s503_s9), 1 }
  0x35   : > { %s373_s22 = sshll.u32 %s730_s9, 8 }
  0x36   : > { %s631_s25 = scalar_lea.vmem %s716_s1, %s373_s22 }
  0x70   : > { %199 = vxpose.xlu0.b32.start.end [1/1] (short) %v165_v1, 128 }
  0xb3   : > { %v183_v2 = vpop.trf.xlu0 }
  0xb4   : > { %232 = vst.msk [vmem:[%s631_s25] sm:$0xff] %vm231_vm0, %v183_v2 }
  0xb7   : > { %v184_v3 = vpop.trf.xlu0 }
  0xb8   : > { %233 = vst.msk [vmem:[%s631_s25 + $0x8] sm:$0xff] %vm231_vm0, %v184_v3 }
  0xbb   : > { %v185_v4 = vpop.trf.xlu0 }
  0xbc   : > { %234 = vst.msk [vmem:[%s631_s25 + $0x10] sm:$0xff] %vm231_vm0, %v185_v4 }
  0xbf   : > { %v186_v5 = vpop.trf.xlu0 }
  0xc0   : > { %235 = vst.msk [vmem:[%s631_s25 + $0x18] sm:$0xff] %vm231_vm0, %v186_v5 }
  0xc3   : > { %v187_v6 = vpop.trf.xlu0 }
  0xc4   : > { %236 = vst.msk [vmem:[%s631_s25 + $0x20] sm:$0xff] %vm231_vm0, %v187_v6 }
  0xc7   : > { %v188_v7 = vpop.trf.xlu0 }
  0xc8   : > { %237 = vst.msk [vmem:[%s631_s25 + $0x28] sm:$0xff] %vm231_vm0, %v188_v7 }
  0xcb   : > { %v189_v8 = vpop.trf.xlu0 }
  0xcc   : > { %238 = vst.msk [vmem:[%s631_s25 + $0x30] sm:$0xff] %vm231_vm0, %v189_v8 }
  0xcf   : > { %v190_v9 = vpop.trf.xlu0 }
  0xd0   : > { %239 = vst.msk [vmem:[%s631_s25 + $0x38] sm:$0xff] %vm231_vm0, %v190_v9 }
  0xd3   : > { %v191_v10 = vpop.trf.xlu0 }
  0xd4   : > { %240 = vst.msk [vmem:[%s631_s25 + $0x40] sm:$0xff] %vm231_vm0, %v191_v10 }
  0xd7   : > { %v192_v11 = vpop.trf.xlu0 }
  0xd8   : > { %241 = vst.msk [vmem:[%s631_s25 + $0x48] sm:$0xff] %vm231_vm0, %v192_v11 }
  0xdb   : > { %v193_v12 = vpop.trf.xlu0 }
  0xdc   : > { %242 = vst.msk [vmem:[%s631_s25 + $0x50] sm:$0xff] %vm231_vm0, %v193_v12 }
  0xdf   : > { %v194_v13 = vpop.trf.xlu0 }
  0xe0   : > { %243 = vst.msk [vmem:[%s631_s25 + $0x58] sm:$0xff] %vm231_vm0, %v194_v13 }
  0xe3   : > { %v195_v14 = vpop.trf.xlu0 }
  0xe4   : > { %244 = vst.msk [vmem:[%s631_s25 + $0x60] sm:$0xff] %vm231_vm0, %v195_v14 }
  0xe7   : > { %v196_v15 = vpop.trf.xlu0 }
  0xe8   : > { %245 = vst.msk [vmem:[%s631_s25 + $0x68] sm:$0xff] %vm231_vm0, %v196_v15 }
  0xeb   : > { %v197_v16 = vpop.trf.xlu0 }
  0xec   : > { %246 = vst.msk [vmem:[%s631_s25 + $0x70] sm:$0xff] %vm231_vm0, %v197_v16 }
  0xef   : > { %v198_v17 = vpop.trf.xlu0 }
  0xf0   : > { %247 = vst.msk [vmem:[%s631_s25 + $0x78] sm:$0xff] %vm231_vm0, %v198_v17 }
  0xf3   : > { %v215_v18 = vpop.trf.xlu0 }
  0xf4   : > { %248 = vst.msk [vmem:[%s631_s25 + $0x80] sm:$0xff] %vm231_vm0, %v215_v18 }
  0xf7   : > { %v216_v19 = vpop.trf.xlu0 }
  0xf8   : > { %249 = vst.msk [vmem:[%s631_s25 + $0x88] sm:$0xff] %vm231_vm0, %v216_v19 }
  0xfb   : > { %v217_v20 = vpop.trf.xlu0 }
  0xfc   : > { %250 = vst.msk [vmem:[%s631_s25 + $0x90] sm:$0xff] %vm231_vm0, %v217_v20 }
  0xff   : > { %v218_v21 = vpop.trf.xlu0 }
 0x100   : > { %251 = vst.msk [vmem:[%s631_s25 + $0x98] sm:$0xff] %vm231_vm0, %v218_v21 }
 0x103   : > { %v219_v22 = vpop.trf.xlu0 }
 0x104   : > { %252 = vst.msk [vmem:[%s631_s25 + $0xa0] sm:$0xff] %vm231_vm0, %v219_v22 }
 0x107   : > { %v220_v23 = vpop.trf.xlu0 }
 0x108   : > { %253 = vst.msk [vmem:[%s631_s25 + $0xa8] sm:$0xff] %vm231_vm0, %v220_v23 }
 0x10b   : > { %v221_v24 = vpop.trf.xlu0 }
 0x10c   : > { %254 = vst.msk [vmem:[%s631_s25 + $0xb0] sm:$0xff] %vm231_vm0, %v221_v24 }
 0x10f   : > { %v222_v25 = vpop.trf.xlu0 }
 0x110   : > { %255 = vst.msk [vmem:[%s631_s25 + $0xb8] sm:$0xff] %vm231_vm0, %v222_v25 }
 0x113   : > { %v223_v26 = vpop.trf.xlu0 }
 0x114   : > { %256 = vst.msk [vmem:[%s631_s25 + $0xc0] sm:$0xff] %vm231_vm0, %v223_v26 }
 0x117   : > { %v224_v27 = vpop.trf.xlu0 }
 0x118   : > { %257 = vst.msk [vmem:[%s631_s25 + $0xc8] sm:$0xff] %vm231_vm0, %v224_v27 }
 0x11b   : > { %v225_v28 = vpop.trf.xlu0 }
 0x11c   : > { %258 = vst.msk [vmem:[%s631_s25 + $0xd0] sm:$0xff] %vm231_vm0, %v225_v28 }
 0x11f   : > { %v226_v29 = vpop.trf.xlu0 }
 0x120   : > { %259 = vst.msk [vmem:[%s631_s25 + $0xd8] sm:$0xff] %vm231_vm0, %v226_v29 }
 0x123   : > { %v227_v30 = vpop.trf.xlu0 }
 0x124   : > { %260 = vst.msk [vmem:[%s631_s25 + $0xe0] sm:$0xff] %vm231_vm0, %v227_v30 }
 0x127   : > { %v228_v31 = vpop.trf.xlu0 }
 0x128   : > { %261 = vst.msk [vmem:[%s631_s25 + $0xe8] sm:$0xff] %vm231_vm0, %v228_v31 }
 0x12b   : > { %v229_v32 = vpop.trf.xlu0 }
 0x12c   : > { %262 = vst.msk [vmem:[%s631_s25 + $0xf0] sm:$0xff] %vm231_vm0, %v229_v32 }
 0x12f   : > { %v230_v33 = vpop.trf.xlu0 }
 0x130   : > { %263 = vst.msk [vmem:[%s631_s25 + $0xf8] sm:$0xff] %vm231_vm0, %v230_v33 }
 0x131 PF: > { %s14_s11 = sadd.s32 1, %s511_s11   ;;  %s722_s6 = smov %s495_s7 }
 0x132   : > { %p11_p7 = scmp.ge.s32.totalorder %s14_s11, 4   ;;  %s723_s7 = smov %s499_s8 }
 0x133   : > { %s724_s8 = smov %s573_s18  ;;  %s725_s9 = smov %s507_s10 }
 0x134   : > { %s726_s10 = smov %s728_s13  ;;  %13 = sbr.rel (!%p11_p7) target bundleno = 4 (0x4), region = 64 }
 0x13b   :  { %294 = vsyncpa [#allocation3], 1 }
 0x13c   :  { %296 = vsyncpa [#allocation3 + $0x1], 1 }

</bundles_post_ra>
